<compile_context>
chip_gen: v7x
topology: tpu7x:2x2x1
jax: 0.10.0
libtpu: 0.0.40
codegen_flags: <defaults>
</compile_context>

<pallas_src>
import functools

import jax
import jax.numpy as jnp
from jax.experimental import pallas as pl
from jax.experimental.pallas import tpu as pltpu


def policy_net_kernel(x_ref, w1_ref, b1_ref, w2_ref, b2_ref, out_ref):
    # x: (Bt, S), w1: (S, H), b1: (1, H), w2: (H, A), b2: (1, A), out: (Bt, A)
    x = x_ref[...]
    # fc1 + ReLU (f32 accumulation on the MXU)
    h = jnp.dot(x, w1_ref[...], preferred_element_type=jnp.float32) + b1_ref[...]
    h = jnp.maximum(h, 0.0)
    # fc2
    logits = jnp.dot(h, w2_ref[...], preferred_element_type=jnp.float32) + b2_ref[...]
    # numerically stable softmax over the last dim; exact normalization so
    # rows sum to 1 to f32 precision (downstream sampling relies on this).
    m = jnp.max(logits, axis=-1, keepdims=True)
    e = jnp.exp(logits - m)
    denom = jnp.sum(e, axis=-1, keepdims=True)
    out_ref[...] = (e / denom).astype(out_ref.dtype)


def _round_up(n, m):
    return ((n + m - 1) // m) * m


@functools.partial(jax.jit, static_argnames=("block_b",))
def policy_network_forward(x, w1, b1, w2, b2, *, block_b=8192):
    """x: (B, S); w1: (S, H); b1: (H,)|(1,H); w2: (H, A); b2: (A,)|(1,A) -> (B, A)."""
    B, S = x.shape
    H = w1.shape[1]
    A = w2.shape[1]
    b1 = b1.reshape(1, H)
    b2 = b2.reshape(1, A)

    out_shape = jax.ShapeDtypeStruct((B, A), jnp.float32)

    if B < 64:
        # Tiny batch: single invocation, no grid / pipeline machinery; the
        # whole working set (a few KB) is resident in VMEM.
        vmem = pl.BlockSpec(memory_space=pltpu.MemorySpace.VMEM)
        return pl.pallas_call(
            policy_net_kernel,
            out_shape=out_shape,
            in_specs=[vmem, vmem, vmem, vmem, vmem],
            out_specs=vmem,
        )(x, w1, b1, w2, b2)

    # Batched path: tile only the batch dim (multiple of 8 sublanes).  Always
    # split into >= 2 tiles so v7x's two TensorCores both get work; weights
    # stay resident as full-array blocks (constant index_map).  The ragged
    # last block is handled by Pallas -- no wrapper-side padding of x.
    tile_b = min(_round_up(block_b, 8), _round_up(pl.cdiv(B, 2), 8))
    grid_b = pl.cdiv(B, tile_b)
    return pl.pallas_call(
        policy_net_kernel,
        out_shape=out_shape,
        grid=(grid_b,),
        in_specs=[
            pl.BlockSpec((tile_b, S), lambda i: (i, 0)),
            pl.BlockSpec((S, H), lambda i: (0, 0)),
            pl.BlockSpec((1, H), lambda i: (0, 0)),
            pl.BlockSpec((H, A), lambda i: (0, 0)),
            pl.BlockSpec((1, A), lambda i: (0, 0)),
        ],
        out_specs=pl.BlockSpec((tile_b, A), lambda i: (i, 0)),
        compiler_params=pltpu.CompilerParams(
            dimension_semantics=("parallel",)),
    )(x, w1, b1, w2, b2)


def _reference(x, w1, b1, w2, b2):
    h = jnp.maximum(x @ w1 + b1.reshape(1, -1), 0.0)
    return jax.nn.softmax(h @ w2 + b2.reshape(1, -1), axis=-1)


if __name__ == "__main__":
    # Module dims implied by MazeEnv: state_size = 4*4 = 16, hidden = 24, actions = 4
    state_size = 16
    hidden = 24
    action_size = 4

    key = jax.random.PRNGKey(0)
    kx, kw1, kb1, kw2, kb2, kx2, kx3 = jax.random.split(key, 7)

    # nn.Linear-style init: U(-1/sqrt(fan_in), 1/sqrt(fan_in))
    lim1 = 1.0 / jnp.sqrt(jnp.float32(state_size))
    lim2 = 1.0 / jnp.sqrt(jnp.float32(hidden))
    w1 = jax.random.uniform(kw1, (state_size, hidden), jnp.float32, -lim1, lim1)
    b1 = jax.random.uniform(kb1, (hidden,), jnp.float32, -lim1, lim1)
    w2 = jax.random.uniform(kw2, (hidden, action_size), jnp.float32, -lim2, lim2)
    b2 = jax.random.uniform(kb2, (action_size,), jnp.float32, -lim2, lim2)

    def check(x, out, name):
        ref = _reference(x, w1, b1, w2, b2)
        assert out.shape == (x.shape[0], action_size), f"{name}: shape"
        assert jnp.allclose(out, ref, atol=1e-4, rtol=1e-4), f"{name}: values"
        assert jnp.allclose(jnp.sum(out, axis=-1), 1.0, atol=1e-4), f"{name}: row sums"

    # 1) tiny batch (batch=2): no-grid, fully VMEM-resident path
    x_small = jax.random.normal(kx, (2, state_size), jnp.float32)
    out_small = jax.block_until_ready(policy_network_forward(x_small, w1, b1, w2, b2))
    check(x_small, out_small, "small")

    # 2) mid batch (96): default tiling -> exactly 2 parallel tiles (both v7x cores)
    x_mid = jax.random.normal(kx2, (96, state_size), jnp.float32)
    out_mid = jax.block_until_ready(policy_network_forward(x_mid, w1, b1, w2, b2))
    check(x_mid, out_mid, "mid")

    # 3) batch (200) that does not divide the tile (64): ragged last block, no x pad
    x_big = jax.random.normal(kx3, (200, state_size), jnp.float32)
    out_big = jax.block_until_ready(
        policy_network_forward(x_big, w1, b1, w2, b2, block_b=64))
    check(x_big, out_big, "ragged")

    print("KERNEL_OK")
</pallas_src>

<mosaic_0001>
module attributes {stable_mosaic.version = 11 : i64} {
  func.func @policy_net_kernel(%arg0: memref<2x16xf32, #tpu.memory_space<vmem>>, %arg1: memref<16x24xf32, #tpu.memory_space<vmem>>, %arg2: memref<1x24xf32, #tpu.memory_space<vmem>>, %arg3: memref<24x4xf32, #tpu.memory_space<vmem>>, %arg4: memref<1x4xf32, #tpu.memory_space<vmem>>, %arg5: memref<2x4xf32, #tpu.memory_space<vmem>>) attributes {dimension_semantics = [], scalar_prefetch = 0 : i64, scratch_operands = 0 : i64, tpu.core_type = #tpu.core_type<tc>} {
    %c0 = arith.constant 0 : index
    %c0_0 = arith.constant 0 : index
    %0 = vector.load %arg0[%c0, %c0_0] : memref<2x16xf32, #tpu.memory_space<vmem>>, vector<2x16xf32>
    %c0_1 = arith.constant 0 : index
    %c0_2 = arith.constant 0 : index
    %1 = vector.load %arg1[%c0_1, %c0_2] : memref<16x24xf32, #tpu.memory_space<vmem>>, vector<16x24xf32>
    %cst = arith.constant dense<0.000000e+00> : vector<2x24xf32>
    %2 = tpu.matmul %0, %1, %cst {dimension_numbers = #tpu.dot_dimension_numbers<[1], [0], [0], [1], [0, 0, 1, 1], [], []>} : vector<2x16xf32>, vector<16x24xf32>, vector<2x24xf32> -> vector<2x24xf32>
    %c0_3 = arith.constant 0 : index
    %c0_4 = arith.constant 0 : index
    %3 = vector.load %arg2[%c0_3, %c0_4] : memref<1x24xf32, #tpu.memory_space<vmem>>, vector<1x24xf32>
    %4 = vector.broadcast %3 : vector<1x24xf32> to vector<2x24xf32>
    %5 = arith.addf %2, %4 : vector<2x24xf32>
    %cst_5 = arith.constant 0.000000e+00 : f32
    %6 = vector.broadcast %cst_5 : f32 to vector<2x24xf32>
    %7 = arith.maximumf %5, %6 : vector<2x24xf32>
    %c0_6 = arith.constant 0 : index
    %c0_7 = arith.constant 0 : index
    %8 = vector.load %arg3[%c0_6, %c0_7] : memref<24x4xf32, #tpu.memory_space<vmem>>, vector<24x4xf32>
    %cst_8 = arith.constant dense<0.000000e+00> : vector<2x4xf32>
    %9 = tpu.matmul %7, %8, %cst_8 {dimension_numbers = #tpu.dot_dimension_numbers<[1], [0], [0], [1], [0, 0, 1, 1], [], []>} : vector<2x24xf32>, vector<24x4xf32>, vector<2x4xf32> -> vector<2x4xf32>
    %c0_9 = arith.constant 0 : index
    %c0_10 = arith.constant 0 : index
    %10 = vector.load %arg4[%c0_9, %c0_10] : memref<1x4xf32, #tpu.memory_space<vmem>>, vector<1x4xf32>
    %11 = vector.broadcast %10 : vector<1x4xf32> to vector<2x4xf32>
    %12 = arith.addf %9, %11 : vector<2x4xf32>
    %cst_11 = arith.constant dense<0xFF800000> : vector<2xf32>
    %13 = vector.multi_reduction <maximumf>, %12, %cst_11 [1] : vector<2x4xf32> to vector<2xf32>
    %14 = vector.shape_cast %13 : vector<2xf32> to vector<2x1xf32>
    %15 = vector.broadcast %14 : vector<2x1xf32> to vector<2x4xf32>
    %16 = arith.subf %12, %15 : vector<2x4xf32>
    %17 = math.exp %16 : vector<2x4xf32>
    %cst_12 = arith.constant dense<0.000000e+00> : vector<2xf32>
    %18 = vector.multi_reduction <add>, %17, %cst_12 [1] : vector<2x4xf32> to vector<2xf32>
    %19 = vector.shape_cast %18 : vector<2xf32> to vector<2x1xf32>
    %20 = vector.broadcast %19 : vector<2x1xf32> to vector<2x4xf32>
    %21 = arith.divf %17, %20 : vector<2x4xf32>
    %c0_13 = arith.constant 0 : index
    %c0_14 = arith.constant 0 : index
    %22 = vector.load %arg5[%c0_13, %c0_14] : memref<2x4xf32, #tpu.memory_space<vmem>>, vector<2x4xf32>
    tpu.vector_store %arg5[%c0_13, %c0_14], %21 {strides = array<i32>} : memref<2x4xf32, #tpu.memory_space<vmem>>, vector<2x4xf32>,
    return
  }
}

</mosaic_0001>

<bundles_post_ra>
// kernel: policy_network_forward.1
= control target key start
LH: loop header
LB: loop body
LE: loop exit
PB: predicated region body
PF: predicated region fallthrough
CT: control target
= control target key end

     0   :  { %v282_v2 = vmov 0.0|0.0   ;;  %vm283_vm0 = vmmov 0   ;;  %v284_v4 = vmov 0.0   ;;  %s355_s0 = inlined_call_operand.vmem [shape: f32[2,16], index: 0, kind: input, shape index: {}]   ;;  %s356_s1 = inlined_call_operand.vmem [shape: f32[16,24], index: 1, kind: input, shape index: {}]   ;;  %s357_s2 = inlined_call_operand.vmem [shape: f32[1,24], index: 2, kind: input, shape index: {}]   ;;  %s358_s3 = inlined_call_operand.vmem [shape: f32[24,4], index: 3, kind: input, shape index: {}]   ;;  %s359_s4 = inlined_call_operand.vmem [shape: f32[1,4], index: 4, kind: input, shape index: {}]   ;;  %s360_s5 = inlined_call_operand.hbm [shape: f32[2,4], index: 5, kind: output, shape index: {}]  }
   0x1   :  { %v22_v0 = vld [vmem:[%s356_s1] sm:$0xff]  ;;  %v23_v1 = vld [vmem:[%s356_s1 + $0x8] sm:$0xff]  ;;  %244 = vmatprep.subr.bf16.mxu0 %v282_v2  ;;  %232 = vmatprep.mubr.msk.f32.mxu0 %vm283_vm0, %v284_v4 }
   0x2   :  { %v245_v3 = vpack.c.bf16 %v23_v1, %v22_v0 }
   0x3   :  { %10 = vsyncpa [#allocation3], 0  ;;  %247 = vmatprep.subr.bf16.mxu1 %v282_v2  ;;  %241 = vmatprep.mubr.msk.f32.mxu1 %vm283_vm0, %v284_v4  ;;  %v21_v5 = vld [vmem:[%s355_s0] sm:$0x3]  ;;  %vm31_vm1 = vcmask 130048   ;;  %v107_v7 = vld [vmem:[%s358_s3 + $0x8] sm:$0xff] }
   0x4   :  { %246 = vmatpush3.bf16.msra.mxu0 %v245_v3  ;;  %v106_v6 = vld [vmem:[%s358_s3] sm:$0xff]  ;;  %v108_v9 = vld [vmem:[%s358_s3 + $0x10] sm:$0xff]  ;;  %vm116_vm2 = vcmask 195584   ;;  %vm190_vm3 = vcmask 25600  }
   0x5   :  { %v248_v8 = vpack.c.bf16 %v107_v7, %v106_v6  ;;  %v217_v10 = vld [vmem:[%s357_s2] ss:$0 sm:$0xff]  ;;  %s285_s2 = smov [#allocation2]  }
   0x6   :  { %v219_v15 = vld [vmem:[%s359_s4] ss:$0 sm:$0xff]  ;;  %s209_s3 = sshll.u32 %s285_s2, 4  ;;  %s210_s3 = int_to_ptr.vmem [resolvable:$true] %s209_s3 }
   0x7   :  { %233 = vmatmul.mubr.msk.f32.vlgmr.msra.gmra.mrb[0].mxu0 %vm31_vm1, %v21_v5  ;;  %249 = vmatpush3.bf16.msra.mxu1 %v248_v8  ;;  %s258_s4 = scalar_lea.vmem %s210_s3, 32  ;;  %p263_p1 = scmp.lt.s32.totalorder %s210_s3, %s210_s3 }
   0x8   :  { %239 = vmatprep.subr.mxu1 %v284_v4  ;;  %p259_p0 = scmp.ne.s32.totalorder %s210_s3, %s258_s4  ;;  %p264_p2 = scmp.lt.s32.totalorder %s258_s4, %s258_s4 }
   0xa   :  { %p265_p3 = por %p264_p2, %p263_p1 }
   0xb   :  { %240 = vmatpush3.msra.mxu1 %v108_v9 }
   0xc   :  { %p266_p4 = pnand %p265_p3, %p259_p0 }
  0xda   :  { %v101_v11 = vpop.f32.mrb[0].mxu0 }
  0xdb   :  { %v102_v12 = vadd.f32 %v217_v10, %v101_v11  ;;  %v234_v13 = vpop.f32.mrb[1].mxu0 }
  0xdd   :  { %v105_v14 = vmax.f32 %v102_v12, 0.0 }
  0xdf   :  { %242 = vmatmul.mubr.msk.f32.vlgmr.msra.gmra.mrb[0].mxu1 %vm116_vm2, %v105_v14 }
 0x1b2   :  { %v186_v16 = vpop.f32.mrb[0].mxu1 }
 0x1b3   :  { %v187_v17 = vadd.f32 %v219_v15, %v186_v16  ;;  %v243_v18 = vpop.f32.mrb[1].mxu1 }
 0x1b5   :  { %v191_v19 = vsel %vm190_vm3, %v187_v17, -inf }
 0x1b6   :  { %192 = vmax.xlane.f32.xlu0 %v191_v19 }
 0x243   :  { %v193_v20 = vpop.xlane.xlu0 %192 }
 0x244   :  { %v194_v21 = vsub.f32 %v187_v17, %v193_v20 }
 0x246   :  { %v195_v22 = vmul.f32 1.442695, %v194_v21 }
 0x248   :  { %254 = vpow2.f32 %v195_v22 }
 0x252   :  { %v255_v23 = vpop.eup %254 }
 0x253   :  { %v197_v24 = vsel %vm190_vm3, %v255_v23, 0.0 }
 0x254   :  { %198 = vadd.xlane.f32.xlu0 %v197_v24 }
 0x2e1   :  { %v199_v25 = vpop.xlane.xlu0 %198 }
 0x2e2   :  { %256 = vrcp.f32 %v199_v25 }
 0x2ec   :  { %v257_v26 = vpop.eup %256 }
 0x2ed   :  { %v201_v27 = vmul.f32 %v257_v26, %v255_v23 }
 0x2ef   :  { %202 = vst.msk [vmem:[#allocation2] sm:$0x3] %vm190_vm3, %v201_v27 }
 0x2f0   :  { %269 = shalt.err (!%p266_p4)
}
 0x2f1   :  { %s270_s9 = scalar_lea.hbm %s360_s5, 32 }
 0x2f2   :  { %p271_p5 = scmp.ne.s32.totalorder %s360_s5, %s270_s9  ;;  %p274_p6 = scmp.lt.u32.totalorder %s270_s9, %s360_s5 }
 0x2f4   :  { %p276_p7 = pnand %p274_p6, %p271_p5 }
 0x2f6   :  { %279 = shalt.err (!%p276_p7)
}
 0x2f7   :  { %212 = dma.vmem_to_hbm [thread:$0]  %s210_s3, 32, %s360_s5, [#allocation3]  }
 0x2f8   :  { %280 = dma.done.wait [#allocation3], 32  }
 0x2f9   :  { %281 = vsyncadd [#allocation3], 4294967264 }
 0x2fa   :  { %216 = vsyncpa [#allocation3], 1 }

</bundles_post_ra>
